<compile_context>
chip_gen: v6e
topology: v6e:2x2x1
jax: 0.10.0
libtpu: 0.0.40
codegen_flags: <defaults>
</compile_context>

<pallas_src>
import jax
import jax.numpy as jnp
from jax.experimental import pallas as pl
from jax.experimental.pallas import tpu as pltpu


def decoder_kernel(enc_ref, encp_ref, h_ref, c_ref,
                   wah_ref, ba_ref, v_ref,
                   wcat0_ref, b0_ref,
                   wcat1_ref, b1_ref,
                   wfc_ref, bfc_ref,
                   out_ref):
    B, S, E2 = enc_ref.shape
    H = h_ref.shape[2]

    h0 = h_ref[0]                                   # [B, H] f32
    h1 = h_ref[1]
    c0 = c_ref[0]
    c1 = c_ref[1]

    # ---- Bahdanau attention: softmax_S( v^T tanh(W_h h_top + W_e enc + b) ) ----
    # enc @ W_e arrives precomputed (encp_ref); only the hidden projection runs here.
    hid_proj = jnp.dot(h1.astype(jnp.bfloat16), wah_ref[...],
                       preferred_element_type=jnp.float32)            # [B, H]
    energy = jnp.tanh(encp_ref[...] + hid_proj[:, None, :] + ba_ref[...])  # [B, S, H]

    # Score via VPU multiply + lane reduction (no degenerate N=1 MXU matmul).
    scores = jnp.sum(energy * v_ref[...].reshape(1, 1, H), axis=-1)    # [B, S]
    scores = scores - jnp.max(scores, axis=1, keepdims=True)
    ex = jnp.exp(scores)
    weights = ex / jnp.sum(ex, axis=1, keepdims=True)                  # [B, S]

    # ---- context = bmm(weights.unsqueeze(1), encoder_outputs).squeeze(1) ----
    enc = enc_ref[...].astype(jnp.float32)
    context = jnp.sum(weights[:, :, None] * enc, axis=1)               # [B, E2]

    # ---- single-timestep 2-layer LSTM (PyTorch gate order i, f, g, o) ----
    # One fused matmul per layer: [x | h] @ [W_ih ; W_hh] (bf16 operands, f32 acc).
    def lstm_cell(x, h, c, wcat, b):
        xh = jnp.concatenate([x, h], axis=1).astype(jnp.bfloat16)      # [B, Kx+H]
        gates = jnp.dot(xh, wcat, preferred_element_type=jnp.float32) + b   # [B, 4H]
        i = jax.nn.sigmoid(gates[:, 0 * H:1 * H])
        f = jax.nn.sigmoid(gates[:, 1 * H:2 * H])
        g = jnp.tanh(gates[:, 2 * H:3 * H])
        o = jax.nn.sigmoid(gates[:, 3 * H:4 * H])
        c_new = f * c + i * g
        h_new = o * jnp.tanh(c_new)
        return h_new, c_new

    h0n, c0n = lstm_cell(context, h0, c0, wcat0_ref[...], b0_ref[...])
    # inter-layer dropout is identity in eval mode
    h1n, c1n = lstm_cell(h0n, h1, c1, wcat1_ref[...], b1_ref[...])

    # ---- prediction = relu(fc_out(decoder_outputs.squeeze(1))) ----
    pred = jnp.dot(h1n.astype(jnp.bfloat16), wfc_ref[...],
                   preferred_element_type=jnp.float32) + bfc_ref[...]
    pred = jnp.maximum(pred, 0.0)

    # Single lane-dense output slab: [ pred | h0 | h1 | c0 | c1 ]  -> [B, O + 4H]
    out_ref[...] = jnp.concatenate([pred, h0n, h1n, c0n, c1n], axis=1)


def pack_params(p):
    """Derive kernel-ready parameters from the module's f32 parameters."""
    bf16 = jnp.bfloat16
    return {
        "w_attn_e": p["w_attn_e"],                                    # used in hoisted proj (f32)
        "w_attn_h": p["w_attn_h"].astype(bf16),
        "b_attn":   p["b_attn"],
        "v":        p["v"].reshape(1, -1),                            # (H,1) -> (1,H)
        "w_cat0":   jnp.concatenate([p["w_ih0_t"], p["w_hh0_t"]], axis=0).astype(bf16),
        "b0":       p["b0"],
        "w_cat1":   jnp.concatenate([p["w_ih1_t"], p["w_hh1_t"]], axis=0).astype(bf16),
        "b1":       p["b1"],
        "w_fc":     p["w_fc"].astype(bf16),
        "b_fc":     p["b_fc"],
    }


def decoder_forward(enc, hidden, cell, pk):
    B, S, E2 = enc.shape
    L, _, H = hidden.shape
    assert L == 2, "kernel is specialized for n_layers == 2"
    O = pk["w_fc"].shape[1]

    # Hoisted Bahdanau encoder projection (decode-step invariant; in a real decode
    # loop this is computed once per sequence, not once per token).
    enc_proj = jnp.einsum("bse,eh->bsh", enc, pk["w_attn_e"])          # [B, S, H] f32

    args = (enc.astype(jnp.bfloat16), enc_proj, hidden, cell,
            pk["w_attn_h"], pk["b_attn"], pk["v"],
            pk["w_cat0"], pk["b0"],
            pk["w_cat1"], pk["b1"],
            pk["w_fc"], pk["b_fc"])

    W = O + 4 * H
    vmem = lambda: pl.BlockSpec(memory_space=pltpu.MemorySpace.VMEM)
    out = pl.pallas_call(
        decoder_kernel,
        out_shape=jax.ShapeDtypeStruct((B, W), jnp.float32),
        in_specs=[vmem() for _ in args],
        out_specs=vmem(),
    )(*args)

    pred = out[:, :O]
    h_new = jnp.stack([out[:, O:O + H], out[:, O + H:O + 2 * H]], axis=0)
    c_new = jnp.stack([out[:, O + 2 * H:O + 3 * H], out[:, O + 3 * H:O + 4 * H]], axis=0)
    return pred, h_new, c_new


def decoder_reference(enc, hidden, cell, p):
    """Plain-JAX f32 reference mirroring the PyTorch forward semantics."""
    B, S, E2 = enc.shape
    H = hidden.shape[2]
    h1 = hidden[1]
    energy = jnp.tanh(enc @ p["w_attn_e"] + (h1 @ p["w_attn_h"])[:, None, :] + p["b_attn"])
    scores = (energy.reshape(B * S, H) @ p["v"]).reshape(B, S)
    weights = jax.nn.softmax(scores, axis=1)
    context = jnp.einsum("bs,bse->be", weights, enc)

    def cell_fn(x, h, c, wih_t, whh_t, b):
        g = x @ wih_t + h @ whh_t + b
        i, f, gg, o = (jax.nn.sigmoid(g[:, :H]), jax.nn.sigmoid(g[:, H:2 * H]),
                       jnp.tanh(g[:, 2 * H:3 * H]), jax.nn.sigmoid(g[:, 3 * H:]))
        c_new = f * c + i * gg
        return o * jnp.tanh(c_new), c_new

    h0n, c0n = cell_fn(context, hidden[0], cell[0], p["w_ih0_t"], p["w_hh0_t"], p["b0"])
    h1n, c1n = cell_fn(h0n, hidden[1], cell[1], p["w_ih1_t"], p["w_hh1_t"], p["b1"])
    pred = jnp.maximum(h1n @ p["w_fc"] + p["b_fc"], 0.0)
    return pred, jnp.stack([h0n, h1n]), jnp.stack([c0n, c1n])


def init_params(key, enc_hid, dec_hid, output_dim):
    E2, H, O = 2 * enc_hid, dec_hid, output_dim
    ks = jax.random.split(key, 12)
    s = 0.1
    return {
        "w_attn_h": s * jax.random.normal(ks[0], (H, H), jnp.float32),
        "w_attn_e": s * jax.random.normal(ks[1], (E2, H), jnp.float32),
        "b_attn":   s * jax.random.normal(ks[2], (1, H), jnp.float32),
        "v":        s * jax.random.normal(ks[3], (H, 1), jnp.float32),
        "w_ih0_t":  s * jax.random.normal(ks[4], (E2, 4 * H), jnp.float32),
        "w_hh0_t":  s * jax.random.normal(ks[5], (H, 4 * H), jnp.float32),
        "b0":       s * jax.random.normal(ks[6], (1, 4 * H), jnp.float32),
        "w_ih1_t":  s * jax.random.normal(ks[7], (H, 4 * H), jnp.float32),
        "w_hh1_t":  s * jax.random.normal(ks[8], (H, 4 * H), jnp.float32),
        "b1":       s * jax.random.normal(ks[9], (1, 4 * H), jnp.float32),
        "w_fc":     s * jax.random.normal(ks[10], (H, O), jnp.float32),
        "b_fc":     s * jax.random.normal(ks[11], (1, O), jnp.float32),
    }


if __name__ == "__main__":
    B, S = 2, 8
    enc_hid, dec_hid, output_dim, n_layers = 16, 32, 16, 2

    key = jax.random.PRNGKey(0)
    k_enc, k_h, k_c, k_p = jax.random.split(key, 4)
    enc_out = jax.random.normal(k_enc, (B, S, 2 * enc_hid), jnp.float32)
    hidden = jax.random.normal(k_h, (n_layers, B, dec_hid), jnp.float32)
    cell = jax.random.normal(k_c, (n_layers, B, dec_hid), jnp.float32)

    params = init_params(k_p, enc_hid, dec_hid, output_dim)
    packed = pack_params(params)

    pred, h_new, c_new = jax.block_until_ready(
        decoder_forward(enc_out, hidden, cell, packed))

    # Tolerances are loosened vs. the pure-f32 version because MXU operands
    # (weights / gate inputs / enc) are rounded to bf16 in the kernel while the
    # reference stays f32; accumulation in-kernel remains f32.
    pred_ref, h_ref, c_ref = decoder_reference(enc_out, hidden, cell, params)
    assert jnp.allclose(pred, pred_ref, atol=5e-2, rtol=5e-2)
    assert jnp.allclose(h_new, h_ref, atol=5e-2, rtol=5e-2)
    assert jnp.allclose(c_new, c_ref, atol=5e-2, rtol=5e-2)

    print("KERNEL_OK")
</pallas_src>

<mosaic_0001>
module attributes {stable_mosaic.version = 11 : i64} {
  func.func @decoder_kernel(%arg0: memref<2x8x32xbf16, #tpu.memory_space<vmem>>, %arg1: memref<2x8x32xf32, #tpu.memory_space<vmem>>, %arg2: memref<2x2x32xf32, #tpu.memory_space<vmem>>, %arg3: memref<2x2x32xf32, #tpu.memory_space<vmem>>, %arg4: memref<32x32xbf16, #tpu.memory_space<vmem>>, %arg5: memref<1x32xf32, #tpu.memory_space<vmem>>, %arg6: memref<1x32xf32, #tpu.memory_space<vmem>>, %arg7: memref<64x128xbf16, #tpu.memory_space<vmem>>, %arg8: memref<1x128xf32, #tpu.memory_space<vmem>>, %arg9: memref<64x128xbf16, #tpu.memory_space<vmem>>, %arg10: memref<1x128xf32, #tpu.memory_space<vmem>>, %arg11: memref<32x16xbf16, #tpu.memory_space<vmem>>, %arg12: memref<1x16xf32, #tpu.memory_space<vmem>>, %arg13: memref<2x144xf32, #tpu.memory_space<vmem>>) attributes {dimension_semantics = [], scalar_prefetch = 0 : i64, scratch_operands = 0 : i64, tpu.core_type = #tpu.core_type<tc>} {
    %c0 = arith.constant 0 : index
    %c0_0 = arith.constant 0 : index
    %c0_1 = arith.constant 0 : index
    %0 = vector.load %arg2[%c0, %c0_0, %c0_1] : memref<2x2x32xf32, #tpu.memory_space<vmem>>, vector<1x2x32xf32>
    %1 = vector.shape_cast %0 : vector<1x2x32xf32> to vector<2x32xf32>
    %c1 = arith.constant 1 : index
    %c0_2 = arith.constant 0 : index
    %c0_3 = arith.constant 0 : index
    %2 = vector.load %arg2[%c1, %c0_2, %c0_3] : memref<2x2x32xf32, #tpu.memory_space<vmem>>, vector<1x2x32xf32>
    %3 = vector.shape_cast %2 : vector<1x2x32xf32> to vector<2x32xf32>
    %c0_4 = arith.constant 0 : index
    %c0_5 = arith.constant 0 : index
    %c0_6 = arith.constant 0 : index
    %4 = vector.load %arg3[%c0_4, %c0_5, %c0_6] : memref<2x2x32xf32, #tpu.memory_space<vmem>>, vector<1x2x32xf32>
    %5 = vector.shape_cast %4 : vector<1x2x32xf32> to vector<2x32xf32>
    %c1_7 = arith.constant 1 : index
    %c0_8 = arith.constant 0 : index
    %c0_9 = arith.constant 0 : index
    %6 = vector.load %arg3[%c1_7, %c0_8, %c0_9] : memref<2x2x32xf32, #tpu.memory_space<vmem>>, vector<1x2x32xf32>
    %7 = vector.shape_cast %6 : vector<1x2x32xf32> to vector<2x32xf32>
    %8 = arith.truncf %3 : vector<2x32xf32> to vector<2x32xbf16>
    %c0_10 = arith.constant 0 : index
    %c0_11 = arith.constant 0 : index
    %9 = vector.load %arg4[%c0_10, %c0_11] : memref<32x32xbf16, #tpu.memory_space<vmem>>, vector<32x32xbf16>
    %cst = arith.constant dense<0.000000e+00> : vector<2x32xf32>
    %10 = tpu.matmul %8, %9, %cst {dimension_numbers = #tpu.dot_dimension_numbers<[1], [0], [0], [1], [0, 0, 1, 1], [], []>} : vector<2x32xbf16>, vector<32x32xbf16>, vector<2x32xf32> -> vector<2x32xf32>
    %c0_12 = arith.constant 0 : index
    %c0_13 = arith.constant 0 : index
    %c0_14 = arith.constant 0 : index
    %11 = vector.load %arg1[%c0_12, %c0_13, %c0_14] : memref<2x8x32xf32, #tpu.memory_space<vmem>>, vector<2x8x32xf32>
    %12 = vector.shape_cast %10 : vector<2x32xf32> to vector<2x1x32xf32>
    %13 = vector.broadcast %12 : vector<2x1x32xf32> to vector<2x8x32xf32>
    %14 = arith.addf %11, %13 : vector<2x8x32xf32>
    %c0_15 = arith.constant 0 : index
    %c0_16 = arith.constant 0 : index
    %15 = vector.load %arg5[%c0_15, %c0_16] : memref<1x32xf32, #tpu.memory_space<vmem>>, vector<1x32xf32>
    %16 = vector.shape_cast %15 : vector<1x32xf32> to vector<1x1x32xf32>
    %17 = vector.broadcast %16 : vector<1x1x32xf32> to vector<2x8x32xf32>
    %18 = arith.addf %14, %17 : vector<2x8x32xf32>
    %19 = math.tanh %18 : vector<2x8x32xf32>
    %c0_17 = arith.constant 0 : index
    %c0_18 = arith.constant 0 : index
    %20 = vector.load %arg6[%c0_17, %c0_18] : memref<1x32xf32, #tpu.memory_space<vmem>>, vector<1x32xf32>
    %21 = vector.shape_cast %20 : vector<1x32xf32> to vector<1x1x32xf32>
    %22 = vector.broadcast %21 : vector<1x1x32xf32> to vector<2x8x32xf32>
    %23 = arith.mulf %19, %22 : vector<2x8x32xf32>
    %cst_19 = arith.constant dense<0.000000e+00> : vector<2x8xf32>
    %24 = vector.multi_reduction <add>, %23, %cst_19 [2] : vector<2x8x32xf32> to vector<2x8xf32>
    %cst_20 = arith.constant dense<0xFF800000> : vector<2xf32>
    %25 = vector.multi_reduction <maximumf>, %24, %cst_20 [1] : vector<2x8xf32> to vector<2xf32>
    %26 = vector.shape_cast %25 : vector<2xf32> to vector<2x1xf32>
    %27 = vector.broadcast %26 : vector<2x1xf32> to vector<2x8xf32>
    %28 = arith.subf %24, %27 : vector<2x8xf32>
    %29 = math.exp %28 : vector<2x8xf32>
    %cst_21 = arith.constant dense<0.000000e+00> : vector<2xf32>
    %30 = vector.multi_reduction <add>, %29, %cst_21 [1] : vector<2x8xf32> to vector<2xf32>
    %31 = vector.shape_cast %30 : vector<2xf32> to vector<2x1xf32>
    %32 = vector.broadcast %31 : vector<2x1xf32> to vector<2x8xf32>
    %33 = arith.divf %29, %32 : vector<2x8xf32>
    %c0_22 = arith.constant 0 : index
    %c0_23 = arith.constant 0 : index
    %c0_24 = arith.constant 0 : index
    %34 = vector.load %arg0[%c0_22, %c0_23, %c0_24] : memref<2x8x32xbf16, #tpu.memory_space<vmem>>, vector<2x8x32xbf16>
    %35 = arith.extf %34 : vector<2x8x32xbf16> to vector<2x8x32xf32>
    %36 = vector.shape_cast %33 : vector<2x8xf32> to vector<2x8x1xf32>
    %37 = vector.broadcast %36 : vector<2x8x1xf32> to vector<2x8x32xf32>
    %38 = arith.mulf %37, %35 : vector<2x8x32xf32>
    %cst_25 = arith.constant dense<0.000000e+00> : vector<2x32xf32>
    %39 = vector.multi_reduction <add>, %38, %cst_25 [1] : vector<2x8x32xf32> to vector<2x32xf32>
    %c0_26 = arith.constant 0 : index
    %c0_27 = arith.constant 0 : index
    %40 = vector.load %arg7[%c0_26, %c0_27] : memref<64x128xbf16, #tpu.memory_space<vmem>>, vector<64x128xbf16>
    %c0_28 = arith.constant 0 : index
    %c0_29 = arith.constant 0 : index
    %41 = vector.load %arg8[%c0_28, %c0_29] : memref<1x128xf32, #tpu.memory_space<vmem>>, vector<1x128xf32>
    %42 = tpu.concatenate %39, %1 in 1 : vector<2x32xf32>, vector<2x32xf32> -> vector<2x64xf32>
    %43 = arith.truncf %42 : vector<2x64xf32> to vector<2x64xbf16>
    %cst_30 = arith.constant dense<0.000000e+00> : vector<2x128xf32>
    %44 = tpu.matmul %43, %40, %cst_30 {dimension_numbers = #tpu.dot_dimension_numbers<[1], [0], [0], [1], [0, 0, 1, 1], [], []>} : vector<2x64xbf16>, vector<64x128xbf16>, vector<2x128xf32> -> vector<2x128xf32>
    %45 = vector.broadcast %41 : vector<1x128xf32> to vector<2x128xf32>
    %46 = arith.addf %44, %45 : vector<2x128xf32>
    %47 = vector.extract_strided_slice %46 {offsets = [0, 0], sizes = [2, 32], strides = [1, 1]} : vector<2x128xf32> to vector<2x32xf32>
    %48 = arith.negf %47 : vector<2x32xf32>
    %49 = math.exp %48 : vector<2x32xf32>
    %cst_31 = arith.constant 1.000000e+00 : f32
    %50 = vector.broadcast %cst_31 : f32 to vector<2x32xf32>
    %51 = arith.addf %50, %49 : vector<2x32xf32>
    %52 = arith.divf %50, %51 : vector<2x32xf32>
    %53 = vector.extract_strided_slice %46 {offsets = [0, 32], sizes = [2, 32], strides = [1, 1]} : vector<2x128xf32> to vector<2x32xf32>
    %54 = arith.negf %53 : vector<2x32xf32>
    %55 = math.exp %54 : vector<2x32xf32>
    %cst_32 = arith.constant 1.000000e+00 : f32
    %56 = vector.broadcast %cst_32 : f32 to vector<2x32xf32>
    %57 = arith.addf %56, %55 : vector<2x32xf32>
    %58 = arith.divf %56, %57 : vector<2x32xf32>
    %59 = vector.extract_strided_slice %46 {offsets = [0, 64], sizes = [2, 32], strides = [1, 1]} : vector<2x128xf32> to vector<2x32xf32>
    %60 = math.tanh %59 : vector<2x32xf32>
    %61 = vector.extract_strided_slice %46 {offsets = [0, 96], sizes = [2, 32], strides = [1, 1]} : vector<2x128xf32> to vector<2x32xf32>
    %62 = arith.negf %61 : vector<2x32xf32>
    %63 = math.exp %62 : vector<2x32xf32>
    %cst_33 = arith.constant 1.000000e+00 : f32
    %64 = vector.broadcast %cst_33 : f32 to vector<2x32xf32>
    %65 = arith.addf %64, %63 : vector<2x32xf32>
    %66 = arith.divf %64, %65 : vector<2x32xf32>
    %67 = arith.mulf %58, %5 : vector<2x32xf32>
    %68 = arith.mulf %52, %60 : vector<2x32xf32>
    %69 = arith.addf %67, %68 : vector<2x32xf32>
    %70 = math.tanh %69 : vector<2x32xf32>
    %71 = arith.mulf %66, %70 : vector<2x32xf32>
    %c0_34 = arith.constant 0 : index
    %c0_35 = arith.constant 0 : index
    %72 = vector.load %arg9[%c0_34, %c0_35] : memref<64x128xbf16, #tpu.memory_space<vmem>>, vector<64x128xbf16>
    %c0_36 = arith.constant 0 : index
    %c0_37 = arith.constant 0 : index
    %73 = vector.load %arg10[%c0_36, %c0_37] : memref<1x128xf32, #tpu.memory_space<vmem>>, vector<1x128xf32>
    %74 = tpu.concatenate %71, %3 in 1 : vector<2x32xf32>, vector<2x32xf32> -> vector<2x64xf32>
    %75 = arith.truncf %74 : vector<2x64xf32> to vector<2x64xbf16>
    %cst_38 = arith.constant dense<0.000000e+00> : vector<2x128xf32>
    %76 = tpu.matmul %75, %72, %cst_38 {dimension_numbers = #tpu.dot_dimension_numbers<[1], [0], [0], [1], [0, 0, 1, 1], [], []>} : vector<2x64xbf16>, vector<64x128xbf16>, vector<2x128xf32> -> vector<2x128xf32>
    %77 = vector.broadcast %73 : vector<1x128xf32> to vector<2x128xf32>
    %78 = arith.addf %76, %77 : vector<2x128xf32>
    %79 = vector.extract_strided_slice %78 {offsets = [0, 0], sizes = [2, 32], strides = [1, 1]} : vector<2x128xf32> to vector<2x32xf32>
    %80 = arith.negf %79 : vector<2x32xf32>
    %81 = math.exp %80 : vector<2x32xf32>
    %cst_39 = arith.constant 1.000000e+00 : f32
    %82 = vector.broadcast %cst_39 : f32 to vector<2x32xf32>
    %83 = arith.addf %82, %81 : vector<2x32xf32>
    %84 = arith.divf %82, %83 : vector<2x32xf32>
    %85 = vector.extract_strided_slice %78 {offsets = [0, 32], sizes = [2, 32], strides = [1, 1]} : vector<2x128xf32> to vector<2x32xf32>
    %86 = arith.negf %85 : vector<2x32xf32>
    %87 = math.exp %86 : vector<2x32xf32>
    %cst_40 = arith.constant 1.000000e+00 : f32
    %88 = vector.broadcast %cst_40 : f32 to vector<2x32xf32>
    %89 = arith.addf %88, %87 : vector<2x32xf32>
    %90 = arith.divf %88, %89 : vector<2x32xf32>
    %91 = vector.extract_strided_slice %78 {offsets = [0, 64], sizes = [2, 32], strides = [1, 1]} : vector<2x128xf32> to vector<2x32xf32>
    %92 = math.tanh %91 : vector<2x32xf32>
    %93 = vector.extract_strided_slice %78 {offsets = [0, 96], sizes = [2, 32], strides = [1, 1]} : vector<2x128xf32> to vector<2x32xf32>
    %94 = arith.negf %93 : vector<2x32xf32>
    %95 = math.exp %94 : vector<2x32xf32>
    %cst_41 = arith.constant 1.000000e+00 : f32
    %96 = vector.broadcast %cst_41 : f32 to vector<2x32xf32>
    %97 = arith.addf %96, %95 : vector<2x32xf32>
    %98 = arith.divf %96, %97 : vector<2x32xf32>
    %99 = arith.mulf %90, %7 : vector<2x32xf32>
    %100 = arith.mulf %84, %92 : vector<2x32xf32>
    %101 = arith.addf %99, %100 : vector<2x32xf32>
    %102 = math.tanh %101 : vector<2x32xf32>
    %103 = arith.mulf %98, %102 : vector<2x32xf32>
    %104 = arith.truncf %103 : vector<2x32xf32> to vector<2x32xbf16>
    %c0_42 = arith.constant 0 : index
    %c0_43 = arith.constant 0 : index
    %105 = vector.load %arg11[%c0_42, %c0_43] : memref<32x16xbf16, #tpu.memory_space<vmem>>, vector<32x16xbf16>
    %cst_44 = arith.constant dense<0.000000e+00> : vector<2x16xf32>
    %106 = tpu.matmul %104, %105, %cst_44 {dimension_numbers = #tpu.dot_dimension_numbers<[1], [0], [0], [1], [0, 0, 1, 1], [], []>} : vector<2x32xbf16>, vector<32x16xbf16>, vector<2x16xf32> -> vector<2x16xf32>
    %c0_45 = arith.constant 0 : index
    %c0_46 = arith.constant 0 : index
    %107 = vector.load %arg12[%c0_45, %c0_46] : memref<1x16xf32, #tpu.memory_space<vmem>>, vector<1x16xf32>
    %108 = vector.broadcast %107 : vector<1x16xf32> to vector<2x16xf32>
    %109 = arith.addf %106, %108 : vector<2x16xf32>
    %cst_47 = arith.constant 0.000000e+00 : f32
    %110 = vector.broadcast %cst_47 : f32 to vector<2x16xf32>
    %111 = arith.maximumf %109, %110 : vector<2x16xf32>
    %112 = tpu.concatenate %111, %71, %103, %69, %101 in 1 : vector<2x16xf32>, vector<2x32xf32>, vector<2x32xf32>, vector<2x32xf32>, vector<2x32xf32> -> vector<2x144xf32>
    %c0_48 = arith.constant 0 : index
    %c0_49 = arith.constant 0 : index
    %113 = vector.load %arg13[%c0_48, %c0_49] : memref<2x144xf32, #tpu.memory_space<vmem>>, vector<2x144xf32>
    tpu.vector_store %arg13[%c0_48, %c0_49], %112 {strides = array<i32>} : memref<2x144xf32, #tpu.memory_space<vmem>>, vector<2x144xf32>,
    return
  }
}

</mosaic_0001>

<bundles_post_ra>
// kernel: tpu_custom_call.1
= control target key start
LH: loop header
LB: loop body
LE: loop exit
PB: predicated region body
PF: predicated region fallthrough
CT: control target
= control target key end

     0   :  { %18 = vsyncpa [#allocation3], 0  ;;  %s1353_s0 = inlined_call_operand.hbm [shape: bf16[2,8,32], index: 0, kind: input, shape index: {}]   ;;  %s1354_s1 = inlined_call_operand.hbm [shape: f32[2,8,32], index: 1, kind: input, shape index: {}]   ;;  %s1355_s2 = inlined_call_operand.hbm [shape: f32[2,2,32], index: 2, kind: input, shape index: {}]   ;;  %s1356_s3 = inlined_call_operand.hbm [shape: f32[2,2,32], index: 3, kind: input, shape index: {}]   ;;  %s1357_s4 = inlined_call_operand.hbm [shape: bf16[32,32], index: 4, kind: input, shape index: {}]   ;;  %s1358_s5 = inlined_call_operand.hbm [shape: f32[1,32], index: 5, kind: input, shape index: {}]   ;;  %s1359_s6 = inlined_call_operand.hbm [shape: f32[1,32], index: 6, kind: input, shape index: {}]   ;;  %s1360_s7 = inlined_call_operand.vmem [shape: bf16[64,128], index: 7, kind: input, shape index: {}]   ;;  %s1361_s8 = inlined_call_operand.hbm [shape: f32[1,128], index: 8, kind: input, shape index: {}]   ;;  %s1362_s9 = inlined_call_operand.hbm [shape: bf16[64,128], index: 9, kind: input, shape index: {}]   ;;  %s1363_s10 = inlined_call_operand.vmem [shape: f32[1,128], index: 10, kind: input, shape index: {}]   ;;  %s1364_s11 = inlined_call_operand.vmem [shape: bf16[32,16], index: 11, kind: input, shape index: {}]   ;;  %s1365_s12 = inlined_call_operand.vmem [shape: f32[1,16], index: 12, kind: input, shape index: {}]   ;;  %s1366_s13 = inlined_call_operand.hbm [shape: f32[2,144], index: 13, kind: output, shape index: {}]  }
   0x1   :  { %19 = vsyncpa [#allocation6], 0 }
   0x2   :  { %20 = vsyncpa [#allocation9], 0 }
   0x3   :  { %21 = vsyncpa [#allocation12], 0 }
   0x4   :  { %22 = vsyncpa [#allocation15], 0 }
   0x5   :  { %23 = vsyncpa [#allocation4], 0  ;;  %s1127_s25 = smov [#allocation5]  }
   0x6   :  { %s41_s26 = sshll.u32 %s1127_s25, 4  ;;  %s42_s26 = int_to_ptr.vmem [resolvable:$true] %s41_s26 }
   0x7   :  { %s923_s27 = scalar_lea.vmem %s42_s26, 256  ;;  %p928_p1 = scmp.lt.s32.totalorder %s42_s26, %s42_s26 }
   0x8   :  { %p924_p0 = scmp.ne.s32.totalorder %s42_s26, %s923_s27  ;;  %p929_p2 = scmp.lt.s32.totalorder %s923_s27, %s923_s27 }
   0xa   :  { %p930_p3 = por %p929_p2, %p928_p1 }
   0xc   :  { %p931_p4 = pnand %p930_p3, %p924_p0 }
   0xe   :  { %934 = shalt.err (!%p931_p4)
}
   0xf   :  { %s1128_s28 = smov 128   ;;  %s1129_s29 = smov 8  }
  0x10   :  { %47 = dma.hbm_to_vmem [thread:$0]  %s1354_s1, 256, %s42_s26, [#allocation6], %s1128_s28, %s1128_s28, %s1129_s29  }
  0x11   :  { %s1130_s15 = smov [#allocation8]   ;;  %s1131_s17 = smov [#allocation11]  }
  0x12   :  { %s65_s16 = sshll.u32 %s1130_s15, 4  ;;  %s90_s18 = sshll.u32 %s1131_s17, 4  ;;  %s66_s16 = int_to_ptr.vmem [resolvable:$true] %s65_s16  ;;  %s91_s18 = int_to_ptr.vmem [resolvable:$true] %s90_s18 }
  0x13   :  { %s943_s19 = scalar_lea.vmem %s66_s16, 64  ;;  %p948_p6 = scmp.lt.s32.totalorder %s66_s16, %s66_s16 }
  0x14   :  { %p944_p5 = scmp.ne.s32.totalorder %s66_s16, %s943_s19  ;;  %p949_p7 = scmp.lt.s32.totalorder %s943_s19, %s943_s19 }
  0x16   :  { %p950_p8 = por %p949_p7, %p948_p6 }
  0x18   :  { %p951_p9 = pnand %p950_p8, %p944_p5 }
  0x1a   :  { %954 = shalt.err (!%p951_p9)
}
  0x1b   :  { %s1132_s20 = smov 32   ;;  %s1133_s21 = smov 2  }
  0x1c   :  { %71 = dma.hbm_to_vmem [thread:$0]  %s1356_s3, 64, %s66_s16, [#allocation9], %s1132_s20, %s1132_s20, %s1133_s21  }
  0x1d   :  { %s963_s1 = scalar_lea.vmem %s91_s18, 16  ;;  %s967_s24 = scalar_lea.vmem %s91_s18, 32 }
  0x1e   :  { %p964_p10 = scmp.ne.s32.totalorder %s91_s18, %s963_s1  ;;  %p968_p11 = scmp.lt.s32.totalorder %s91_s18, %s91_s18 }
  0x1f   :  { %p969_p12 = scmp.lt.s32.totalorder %s967_s24, %s963_s1 }
  0x21   :  { %p970_p13 = por %p969_p12, %p968_p11 }
  0x23   :  { %p971_p0 = pnand %p970_p13, %p964_p10 }
  0x25   :  { %974 = shalt.err (!%p971_p0)
}
  0x26   :  { %93 = dma.hbm_to_vmem [thread:$0]  %s1358_s5, 16, %s91_s18, [#allocation12]  }
  0x27   :  { %s1134_s27 = smov [#allocation14]   ;;  %s1135_s29 = smov [#allocation2]  }
  0x28   :  { %s112_s28 = sshll.u32 %s1134_s27, 4  ;;  %s29_s30 = sshll.u32 %s1135_s29, 4  ;;  %s113_s28 = int_to_ptr.vmem [resolvable:$true] %s112_s28  ;;  %s30_s30 = int_to_ptr.vmem [resolvable:$true] %s29_s30 }
  0x29   :  { %s983_s14 = scalar_lea.vmem %s113_s28, 16  ;;  %s987_s3 = scalar_lea.vmem %s113_s28, 32 }
  0x2a   :  { %p984_p1 = scmp.ne.s32.totalorder %s113_s28, %s983_s14  ;;  %p988_p2 = scmp.lt.s32.totalorder %s113_s28, %s113_s28 }
  0x2b   :  { %p989_p3 = scmp.lt.s32.totalorder %s987_s3, %s983_s14 }
  0x2d   :  { %p990_p4 = por %p989_p3, %p988_p2 }
  0x2f   :  { %p991_p5 = pnand %p990_p4, %p984_p1 }
  0x31   :  { %994 = shalt.err (!%p991_p5)
}
  0x32   :  { %115 = dma.hbm_to_vmem [thread:$0]  %s1361_s8, 16, %s113_s28, [#allocation15]  }
  0x33   :  { %s1003_s17 = scalar_lea.vmem %s30_s30, 128  ;;  %p1008_p7 = scmp.lt.s32.totalorder %s30_s30, %s30_s30 }
  0x34   :  { %p1004_p6 = scmp.ne.s32.totalorder %s30_s30, %s1003_s17  ;;  %p1009_p8 = scmp.lt.s32.totalorder %s1003_s17, %s1003_s17 }
  0x36   :  { %p1010_p9 = por %p1009_p8, %p1008_p7 }
  0x38   :  { %p1011_p10 = pnand %p1010_p9, %p1004_p6 }
  0x3a   :  { %1014 = shalt.err (!%p1011_p10)
}
  0x3b   :  { %s1136_s5 = smov 64   ;;  %s1137_s18 = smov 4  }
  0x3c   :  { %35 = dma.hbm_to_vmem [thread:$0]  %s1353_s0, 128, %s30_s30, [#allocation3], %s1136_s5, %s1136_s5, %s1137_s18  }
  0x3d   :  { %s1138_s23 = smov [#allocation7]   ;;  %s1139_s8 = smov [#allocation10]  }
  0x3e   :  { %s53_s1 = sshll.u32 %s1138_s23, 4  ;;  %s77_s24 = sshll.u32 %s1139_s8, 4  ;;  %s54_s1 = int_to_ptr.vmem [resolvable:$true] %s53_s1  ;;  %s78_s24 = int_to_ptr.vmem [resolvable:$true] %s77_s24 }
  0x3f   :  { %s1023_s25 = scalar_lea.vmem %s54_s1, 64  ;;  %p1028_p12 = scmp.lt.s32.totalorder %s54_s1, %s54_s1 }
  0x40   :  { %p1024_p11 = scmp.ne.s32.totalorder %s54_s1, %s1023_s25  ;;  %p1029_p13 = scmp.lt.s32.totalorder %s1023_s25, %s1023_s25 }
  0x42   :  { %p1030_p0 = por %p1029_p13, %p1028_p12 }
  0x44   :  { %p1031_p1 = pnand %p1030_p0, %p1024_p11 }
  0x46   :  { %1034 = shalt.err (!%p1031_p1)
}
  0x47   :  { %59 = dma.hbm_to_vmem [thread:$0]  %s1355_s2, 64, %s54_s1, [#allocation6], %s1132_s20, %s1132_s20, %s1133_s21  }
  0x48   :  { %s1043_s0 = scalar_lea.vmem %s78_s24, 256  ;;  %p1048_p3 = scmp.lt.s32.totalorder %s78_s24, %s78_s24 }
  0x49   :  { %p1044_p2 = scmp.ne.s32.totalorder %s78_s24, %s1043_s0  ;;  %p1049_p4 = scmp.lt.s32.totalorder %s1043_s0, %s1043_s0 }
  0x4b   :  { %p1050_p5 = por %p1049_p4, %p1048_p3 }
  0x4d   :  { %p1051_p6 = pnand %p1050_p5, %p1044_p2 }
  0x4f   :  { %1054 = shalt.err (!%p1051_p6)
}
  0x50   :  { %83 = dma.hbm_to_vmem [thread:$0]  %s1357_s4, 256, %s78_s24, [#allocation9], %s1136_s5, %s1136_s5, %s1137_s18  }
  0x51   :  { %s1140_s30 = smov [#allocation13]   ;;  %s1141_s3 = smov [#allocation16]  }
  0x52   :  { %s100_s14 = sshll.u32 %s1140_s30, 4  ;;  %s121_s2 = sshll.u32 %s1141_s3, 4  ;;  %s101_s14 = int_to_ptr.vmem [resolvable:$true] %s100_s14  ;;  %s122_s2 = int_to_ptr.vmem [resolvable:$true] %s121_s2 }
  0x53   :  { %s1063_s21 = scalar_lea.vmem %s101_s14, 16  ;;  %s1067_s15 = scalar_lea.vmem %s101_s14, 32 }
  0x54   :  { %p1064_p7 = scmp.ne.s32.totalorder %s101_s14, %s1063_s21  ;;  %p1068_p8 = scmp.lt.s32.totalorder %s101_s14, %s101_s14 }
  0x55   :  { %p1069_p9 = scmp.lt.s32.totalorder %s1067_s15, %s1063_s21 }
  0x57   :  { %p1070_p10 = por %p1069_p9, %p1068_p8 }
  0x59   :  { %p1071_p11 = pnand %p1070_p10, %p1064_p7 }
  0x5b   :  { %1074 = shalt.err (!%p1071_p11)
}
  0x5c   :  { %103 = dma.hbm_to_vmem [thread:$0]  %s1359_s6, 16, %s101_s14, [#allocation12]  }
  0x5d   :  { %s1083_s19 = scalar_lea.vmem %s122_s2, 512  ;;  %p1088_p13 = scmp.lt.s32.totalorder %s122_s2, %s122_s2 }
  0x5e   :  { %p1084_p12 = scmp.ne.s32.totalorder %s122_s2, %s1083_s19  ;;  %p1089_p0 = scmp.lt.s32.totalorder %s1083_s19, %s1083_s19 }
  0x60   :  { %p1090_p1 = por %p1089_p0, %p1088_p13 }
  0x62   :  { %p1091_p2 = pnand %p1090_p1, %p1084_p12 }
  0x64   :  { %1094 = shalt.err (!%p1091_p2)
}
  0x65   :  { %127 = dma.hbm_to_vmem [thread:$0]  %s1362_s9, 512, %s122_s2, [#allocation15], %s1136_s5, %s1136_s5, %s1137_s18  }
  0x66   :  { %1115 = dma.done.wait [#allocation3], 128  }
  0x67   :  { %1116 = vsyncadd [#allocation3], 4294967168 }
  0x68   :  { %1117 = dma.done.wait [#allocation6], 320  }
  0x69   :  { %1118 = vsyncadd [#allocation6], 4294966976 }
  0x6a   :  { %1119 = dma.done.wait [#allocation9], 320  }
  0x6b   :  { %1120 = vsyncadd [#allocation9], 4294966976 }
  0x6c   :  { %1121 = dma.done.wait [#allocation12], 32  }
  0x6d   :  { %1122 = vsyncadd [#allocation12], 4294967264 }
  0x6e   :  { %1123 = dma.done.wait [#allocation15], 528  }
  0x6f   :  { %1124 = vsyncadd [#allocation15], 4294966768  ;;  %v1142_v0 = vmov 0.0   ;;  %vm1143_vm0 = vmmov 0   ;;  %v875_v1 = vld [vmem:[#allocation10 + $0x8] sm:$0xff]   ;;  %v876_v2 = vld [vmem:[#allocation10] sm:$0xff]   ;;  %v235_v7 = vlaneseq }
  0x70   :  { %805 = vmatprep.subr.bf16.mxu0 %v1142_v0  ;;  %809 = vmatprep.mubr.msk.bf16.mxu0 %vm1143_vm0, %v1142_v0  ;;  %vm185_vm1 = vcmask 261120   ;;  %v1268_v3 = vld [vmem:[#allocation7 + $0x2] sm:$0x3]  ;;  %v1144_v5 = vmov 1966171168   ;;  %v229_v17 = vld [vmem:[#allocation5] sm:$0xff] }
  0x71   :  { %813 = vmatprep.subr.bf16.mxu1 %v1142_v0  ;;  %821 = vmatprep.mubr.msk.bf16.mxu1 %vm1143_vm0, %v1142_v0  ;;  %v168_v4 = vpack.c.bf16 %v1268_v3, %v1268_v3  ;;  %v233_v6 = vunpack.c.l.s4 %v1144_v5  ;;  %v1277_v9 = vshrl.u32 %v235_v7, 7  ;;  %v230_v21 = vld [vmem:[#allocation5 + $0x8] sm:$0xff]  ;;  %v295_v36 = vand.u32 127, %v235_v7  ;;  %v162_v61 = vld [vmem:[#allocation7] sm:$0x3]  ;;  %s1146_s29 = smov 48  }
  0x72   :  { %806 = vmatpush3.bf16.msra.mxu0 %v875_v1  ;;  %v765_v22 = vld [vmem:[#allocation11] ss:$0 sm:$0xff]  ;;  %v766_v29 = vld [vmem:[#allocation13] ss:$0 sm:$0xff]  ;;  %vm304_vm2 = vcmask 1041409   ;;  %vm307_vm3 = vcmask 58368  }
  0x73   :  { %807 = vmatprep.subr.bf16.mxu0 %v1142_v0  ;;  %v234_v8 = vunpack.c.0.s8 %v233_v6  ;;  %v1281_v13 = vsub.s32 0, %v1277_v9  ;;  %v298_v38 = vsub.s32 %v295_v36, %v1277_v9  ;;  %v1145_v44 = vmov 0   ;;  %v877_v7 = vld [vmem:[%s1360_s7 + $0x18] sm:$0xff]   ;;  %s1147_s30 = smov 80  }
  0x74   :  { %869 = vset.pattern.permute.xlu0 %v1145_v44  ;;  %868 = vset.pattern.permute.xlu1 %v1145_v44  ;;  %v318_v45 = vsub.s32 1, %v1277_v9  ;;  %vm443_vm4 = vcmask 523264   ;;  %v165_v44 = vld [vmem:[#allocation8] sm:$0x3]  ;;  %vm721_vm5 = vcmask 130048   ;;  %vm723_vm6 = vcmask 392192  }
  0x75   :  { %v237_v10 = vsub.s32 %v234_v8, %v1277_v9  ;;  %814 = vmatpush3.bf16.msra.mxu1 %v877_v7  ;;  %v878_v8 = vld [vmem:[%s1360_s7 + $0x10] sm:$0xff]   ;;  %v774_v7 = vld [vmem:[%s1363_s10] ss:$0 sm:$0xff]  ;;  %vm725_vm7 = vcmask 654336   ;;  %vm727_vm8 = vcmask 916480   ;;  %vm739_vm9 = vcmask 1041408  }
  0x76   :  { %808 = vmatpush3.bf16.msra.mxu0 %v876_v2  ;;  %815 = vmatprep.subr.bf16.mxu1 %v1142_v0  ;;  %vm740_vm10 = vcmask 125954  }
  0x77   :  { %825 = vmatprep.subr.bf16.mxu0 %v1142_v0  ;;  %vm741_vm11 = vmor %vm740_vm10, %vm739_vm9 }
  0x79   :  { %810 = vmatmul.mubr.msk.bf16.vlgmr.msra.gmra.mxu0 %vm185_vm1, %v168_v4  ;;  %816 = vmatpush3.bf16.msra.mxu1 %v878_v8 }
  0x7a   :  { %833 = vmatprep.mubr.msk.bf16.mxu0 %vm1143_vm0, %v1142_v0  ;;  %817 = vmatprep.subr.bf16.mxu1 %v1142_v0 }
 0x139   :  { %v223_v11 = vpop.f32.mrf.mxu0 }
 0x13a   :  { %v238_v12 = vrot.slane %v223_v11, %v237_v10  ;;  %v880_v11 = vld [vmem:[%s1360_s7] sm:$0xff]  }
 0x13b   :  { %v811_v14 = vpop.f32.mrf.mxu0 }
 0x13c   :  { %v239_v15 = vcombine.high %v238_v12, %v238_v12  ;;  %v246_v16 = vrot.slane %v238_v12, %v237_v10  ;;  %v786_v12 = vld [vmem:[#allocation2] sm:$0xff]  }
 0x13d   :  { %v226_v18 = vpop.f32.mrf.mxu0 }
 0x13e   :  { %v253_v19 = vrot.slane %v239_v15, %v237_v10  ;;  %v257_v20 = vrot.slane %v246_v16, %v1281_v13  ;;  %v879_v10 = vld [vmem:[%s1360_s7 + $0x8] sm:$0xff]   ;;  %v788_v16 = vunpack.c.h.bf16 %v786_v12 }
 0x13f   :  { %v812_v23 = vpop.f32.mrf.mxu0  ;;  %818 = vmatpush3.bf16.msra.mxu1 %v879_v10 }
 0x140   :  { %v261_v24 = vrot.slane %v253_v19, %v1281_v13  ;;  %v264_v25 = vadd.f32 %v257_v20, %v229_v17  ;;  %819 = vmatprep.subr.bf16.mxu1 %v1142_v0 }
 0x142   :  { %v265_v26 = vadd.f32 %v261_v24, %v230_v21  ;;  %v273_v27 = vadd.f32 %v765_v22, %v264_v25 }
 0x143   :  { %820 = vmatpush3.bf16.msra.mxu1 %v880_v11 }
 0x144   :  { %v274_v28 = vadd.f32 %v765_v22, %v265_v26  ;;  %887 = vtanh.f32 %v273_v27  ;;  %837 = vmatprep.subr.bf16.mxu1 %v1142_v0 }
 0x146   :  { %889 = vtanh.f32 %v274_v28 }
 0x151   :  { %v888_v30 = vpop.eup %887 }
 0x152   :  { %v284_v31 = vmul.f32 %v888_v30, %v766_v29 }
 0x153   :  { %v890_v32 = vpop.eup %889 }
 0x154   :  { %v286_v33 = vsel %vm185_vm1, %v284_v31, 0.0  ;;  %v285_v34 = vmul.f32 %v890_v32, %v766_v29 }
 0x155   :  { %287 = vadd.xlane.f32.xlu0 %v286_v33 }
 0x156   :  { %v289_v35 = vsel %vm185_vm1, %v285_v34, 0.0 }
 0x159   :  { %290 = vadd.xlane.f32.xlu0 %v289_v35 }
 0x1de   :  { %v288_v37 = vpop.xlane.xlu0 %287 }
 0x1df   :  { %v299_v40 = vrot.slane %v288_v37, %v298_v38 }
 0x1e2   :  { %v291_v39 = vpop.xlane.xlu0 %290 }
 0x1e3   :  { %v303_v41 = vrot.slane %v291_v39, %v298_v38 }
 0x1e5   :  { %v305_v42 = vsel %vm304_vm2, %v303_v41, %v299_v40 }
 0x1e6   :  { %v308_v43 = vsel %vm307_vm3, %v305_v42, -inf }
 0x1e7   :  { %309 = vmax.xlane.f32.xlu1 %v308_v43 }
 0x270   :  { %v310_v46 = vpop.xlane.xlu1 %309 }
 0x271   :  { %v315_v47 = vrot.slane %v310_v46, %v1281_v13  ;;  %v319_v48 = vrot.slane %v310_v46, %v318_v45 }
 0x273   :  { %v322_v49 = vsub.f32 %v288_v37, %v315_v47  ;;  %v323_v50 = vsub.f32 %v291_v39, %v319_v48  ;;  %v767_v37 = vld [vmem:[#allocation14] ss:$0 sm:$0xff] }
 0x275   :  { %v324_v51 = vmul.f32 1.442695, %v322_v49  ;;  %v326_v52 = vmul.f32 1.442695, %v323_v50 }
 0x277   :  { %891 = vpow2.f32 %v324_v51 }
 0x278   :  { %893 = vpow2.f32 %v326_v52 }
 0x284   :  { %v892_v53 = vpop.eup %891 }
 0x285   :  { %v894_v54 = vpop.eup %893  ;;  %331 = vperm.xlu1 %868, %v892_v53  }
 0x286   :  { %334 = vperm.xlu0 %869, %v894_v54  }
 0x300   :  { %v332_v55 = vpop.permute.xlu1 %331 }
 0x301   :  { %v335_v56 = vpop.permute.xlu0 %334  ;;  %v339_v57 = vrot.slane %v332_v55, %v298_v38  ;;  %v881_v55 = vld [vmem:[#allocation16 + $0x18] sm:$0xff]  }
 0x302   :  { %v343_v58 = vrot.slane %v335_v56, %v298_v38  ;;  %826 = vmatpush3.bf16.msra.mxu0 %v881_v55  ;;  %v882_v56 = vld [vmem:[#allocation16 + $0x10] sm:$0xff]  }
 0x303   :  { %827 = vmatprep.subr.bf16.mxu0 %v1142_v0 }
 0x304   :  { %v344_v59 = vsel %vm304_vm2, %v343_v58, %v339_v57  ;;  %v883_v57 = vld [vmem:[#allocation16 + $0x8] sm:$0xff]  }
 0x305   :  { %v346_v60 = vsel %vm307_vm3, %v344_v59, 0.0  ;;  %v884_v59 = vld [vmem:[#allocation16] sm:$0xff]  }
 0x306   :  { %347 = vadd.xlane.f32.xlu1 %v346_v60  ;;  %828 = vmatpush3.bf16.msra.mxu0 %v882_v56 }
 0x307   :  { %829 = vmatprep.subr.bf16.mxu0 %v1142_v0 }
 0x30a   :  { %830 = vmatpush3.bf16.msra.mxu0 %v883_v57 }
 0x30b   :  { %831 = vmatprep.subr.bf16.mxu0 %v1142_v0 }
 0x30e   :  { %832 = vmatpush3.bf16.msra.mxu0 %v884_v59 }
 0x317   :  { %408 = vrot.lane.b32.xlu1 %v162_v61, %s1132_s20 }
 0x38f   :  { %v348_v62 = vpop.xlane.xlu1 %347 }
 0x390   :  { %v353_v63 = vrot.slane %v348_v62, %v1281_v13  ;;  %v357_v1 = vrot.slane %v348_v62, %v318_v45  ;;  %v787_v13 = vunpack.c.l.bf16 %v786_v12 }
 0x392   :  { %895 = vrcp.f32 %v353_v63  ;;  %v167_v63 = vld [vmem:[#allocation8 + $0x2] sm:$0x3] }
 0x393   :  { %897 = vrcp.f32 %v357_v1  ;;  %v409_v33 = vpop.permute.xlu1 %408 }
 0x39f   :  { %v896_v2 = vpop.eup %895 }
 0x3a0   :  { %v361_v4 = vmul.f32 %v896_v2, %v892_v53  ;;  %v898_v5 = vpop.eup %897 }
 0x3a1   :  { %v363_v6 = vmul.f32 %v898_v5, %v894_v54 }
 0x3a2   :  { %370 = vperm.xlu0 %869, %v361_v4  }
 0x3a6   :  { %375 = vperm.xlu0 %869, %v363_v6  }
 0x41d   :  { %v371_v14 = vpop.permute.xlu0 %370 }
 0x41e   :  { %v378_v15 = vmul.f32 %v787_v13, %v371_v14 }
 0x420   :  { %v380_v17 = vsel %vm185_vm1, %v378_v15, 0.0 }
 0x421   :  { %v381_v18 = vrot.slane %v380_v17, 4  ;;  %v376_v19 = vpop.permute.xlu0 %375 }
 0x422   :  { %v379_v20 = vmul.f32 %v788_v16, %v376_v19 }
 0x423   :  { %v382_v21 = vadd.f32 %v381_v18, %v380_v17 }
 0x424   :  { %v387_v22 = vsel %vm185_vm1, %v379_v20, 0.0 }
 0x425   :  { %v383_v23 = vrot.slane %v382_v21, 2  ;;  %v388_v24 = vrot.slane %v387_v22, 4 }
 0x427   :  { %v384_v25 = vadd.f32 %v383_v23, %v382_v21  ;;  %v389_v26 = vadd.f32 %v388_v24, %v387_v22 }
 0x429   :  { %v390_v27 = vrot.slane %v389_v26, 2  ;;  %v385_v28 = vrot.slane %v384_v25, 1 }
 0x42b   :  { %v391_v29 = vadd.f32 %v390_v27, %v389_v26  ;;  %v386_v31 = vadd.f32 %v385_v28, %v384_v25  ;;  %v885_v25 = vld [vmem:[%s1364_s11 + $0x8] sm:$0xff]   ;;  %v886_v26 = vld [vmem:[%s1364_s11] sm:$0xff]   ;;  %s1149_s11 = smov [#allocation17]  }
 0x42d   :  { %v392_v30 = vrot.slane %v391_v29, 1 }
 0x42f   :  { %v393_v32 = vadd.f32 %v392_v30, %v391_v29 }
 0x431   :  { %v405_v34 = vsel %vm304_vm2, %v393_v32, %v386_v31  ;;  %v781_v31 = vld [vmem:[%s1365_s12] ss:$0 sm:$0xff]  ;;  %s749_s12 = sshll.u32 %s1149_s11, 4  ;;  %s750_s12 = int_to_ptr.vmem [resolvable:$true] %s749_s12 }
 0x432   :  { %v411_v35 = vsel %vm185_vm1, %v405_v34, %v409_v33  ;;  %p1100_p4 = scmp.lt.s32.totalorder %s750_s12, %s750_s12 }
 0x433   :  { %v412_v36 = vpack.c.bf16 %v411_v35, %v411_v35 }
 0x435   :  { %822 = vmatmul.mubr.msk.bf16.vlgmr.msra.gmra.mxu1 %vm443_vm4, %v412_v36 }
 0x436   :  { %841 = vmatprep.mubr.msk.bf16.mxu1 %vm1143_vm0, %v1142_v0  ;;  %838 = vmatpush3.bf16.msra.mxu1 %v885_v25 }
 0x437   :  { %839 = vmatprep.subr.bf16.mxu1 %v1142_v0  ;;  %v1148_v0 = vmov 1983009808  }
 0x438   :  { %v732_v32 = vunpack.c.l.s4 %v1148_v0 }
 0x43a   :  { %840 = vmatpush3.bf16.msra.mxu1 %v886_v26 }
 0x4f5   :  { %v481_v38 = vpop.f32.mrf.mxu1 }
 0x4f6   :  { %v482_v39 = vadd.f32 %v767_v37, %v481_v38 }
 0x4f7   :  { %v823_v40 = vpop.f32.mrf.mxu1 }
 0x4f8   :  { %899 = vtanh.f32 %v482_v39  ;;  %v773_v45 = vmul.f32 -1.442695, %v482_v39  ;;  %v733_v39 = vunpack.c.0.s8 %v732_v32 }
 0x4f9   :  { %v484_v41 = vpop.f32.mrf.mxu1 }
 0x4fa   :  { %901 = vpow2.f32 %v773_v45 }
 0x4fb   :  { %v824_v42 = vpop.f32.mrf.mxu1 }
 0x505   :  { %v900_v43 = vpop.eup %899 }
 0x506   :  { %500 = vrot.lane.b32.xlu0 %v900_v43, %s1136_s5 }
 0x507   :  { %v902_v46 = vpop.eup %901 }
 0x508   :  { %v490_v47 = vadd.f32 1.0, %v902_v46 }
 0x50a   :  { %495 = vrot.lane.b32.xlu0 %v165_v44, %s1132_s20  ;;  %903 = vrcp.f32 %v490_v47  ;;  %v736_v47 = vsub.s32 %v733_v39, %v1277_v9 }
 0x517   :  { %v904_v48 = vpop.eup %903 }
 0x578   :  { %v501_v49 = vpop.permute.xlu0 %500 }
 0x579   :  { %v503_v50 = vmul.f32 %v904_v48, %v501_v49 }
 0x57b   :  { %505 = vrot.lane.b32.xlu0 %v503_v50, %s1132_s20 }
 0x57c   :  { %v496_v51 = vpop.permute.xlu0 %495 }
 0x57d   :  { %v498_v52 = vmul.f32 %v904_v48, %v496_v51 }
 0x5ed   :  { %v506_v53 = vpop.permute.xlu0 %505 }
 0x5ee   :  { %v508_v54 = vadd.f32 %v506_v53, %v498_v52 }
 0x5f0   :  { %905 = vtanh.f32 %v508_v54 }
 0x5fd   :  { %v906_v58 = vpop.eup %905 }
 0x5fe   :  { %511 = vrot.lane.b32.xlu0 %v906_v58, %s1136_s5 }
 0x670   :  { %v512_v60 = vpop.permute.xlu0 %511 }
 0x671   :  { %v514_v61 = vmul.f32 %v904_v48, %v512_v60 }
 0x673   :  { %v870_v62 = vpack.i.bf16 %v1268_v3, %v514_v61 }
 0x675   :  { %871 = vrot.lane.b32.xlu1 %v870_v62, %s1132_s20 }
 0x679   :  { %615 = vrot.lane.b32.xlu1 %v167_v63, %s1132_s20 }
 0x6e7   :  { %v872_v1 = vpop.permute.xlu1 %871 }
 0x6e8   :  { %v874_v2 = vunpack.i.h.bf16 %v872_v1  ;;  %v873_v4 = vunpack.i.l.bf16 %v872_v1 }
 0x6ea   :  { %v532_v5 = vsel %vm185_vm1, %v873_v4, %v874_v2 }
 0x6eb   :  { %v533_v6 = vpack.c.bf16 %v532_v5, %v532_v5  ;;  %v616_v20 = vpop.permute.xlu1 %615 }
 0x6ed   :  { %834 = vmatmul.mubr.msk.bf16.vlgmr.msra.gmra.mxu0 %vm443_vm4, %v533_v6 }
 0x7ad   :  { %v601_v8 = vpop.f32.mrf.mxu0 }
 0x7ae   :  { %v602_v10 = vadd.f32 %v774_v7, %v601_v8 }
 0x7af   :  { %v835_v3 = vpop.f32.mrf.mxu0 }
 0x7b0   :  { %907 = vtanh.f32 %v602_v10  ;;  %v780_v14 = vmul.f32 -1.442695, %v602_v10 }
 0x7b1   :  { %v604_v11 = vpop.f32.mrf.mxu0 }
 0x7b2   :  { %909 = vpow2.f32 %v780_v14 }
 0x7b3   :  { %v836_v12 = vpop.f32.mrf.mxu0 }
 0x7bd   :  { %v908_v13 = vpop.eup %907 }
 0x7be   :  { %620 = vrot.lane.b32.xlu0 %v908_v13, %s1136_s5 }
 0x7bf   :  { %v910_v15 = vpop.eup %909 }
 0x7c0   :  { %v610_v16 = vadd.f32 1.0, %v910_v15 }
 0x7c2   :  { %911 = vrcp.f32 %v610_v16 }
 0x7cf   :  { %v912_v17 = vpop.eup %911 }
 0x7d0   :  { %v618_v21 = vmul.f32 %v912_v17, %v616_v20 }
 0x830   :  { %v621_v18 = vpop.permute.xlu0 %620 }
 0x831   :  { %v623_v19 = vmul.f32 %v912_v17, %v621_v18 }
 0x833   :  { %625 = vrot.lane.b32.xlu0 %v623_v19, %s1132_s20 }
 0x8a5   :  { %v626_v22 = vpop.permute.xlu0 %625 }
 0x8a6   :  { %v628_v23 = vadd.f32 %v626_v22, %v618_v21 }
 0x8a8   :  { %913 = vtanh.f32 %v628_v23 }
 0x8b5   :  { %v914_v24 = vpop.eup %913 }
 0x8b6   :  { %631 = vrot.lane.b32.xlu1 %v914_v24, %s1136_s5 }
 0x8ba   :  { %706 = vrot.lane.b32.xlu1 %v514_v61, %s1146_s29 }
 0x8be   :  { %714 = vrot.lane.b32.xlu1 %v508_v54, %s1146_s29 }
 0x928   :  { %v632_v27 = vpop.permute.xlu1 %631 }
 0x929   :  { %v634_v28 = vmul.f32 %v912_v17, %v632_v27 }
 0x92b   :  { %v635_v29 = vpack.c.bf16 %v634_v28, %v634_v28 }
 0x92c   :  { %v707_v33 = vpop.permute.xlu1 %706 }
 0x92d   :  { %648 = vrot.lane.b32.xlu0 %v635_v29, %s1132_s20  ;;  %s1095_s20 = scalar_lea.vmem %s750_s12, 64 }
 0x92e   :  { %p1096_p3 = scmp.ne.s32.totalorder %s750_s12, %s1095_s20  ;;  %p1101_p5 = scmp.lt.s32.totalorder %s1095_s20, %s1095_s20 }
 0x930   :  { %v715_v42 = vpop.permute.xlu1 %714  ;;  %p1102_p6 = por %p1101_p5, %p1100_p4 }
 0x931   :  { %710 = vrot.lane.b32.xlu0 %v634_v28, %s1147_s30 }
 0x932   :  { %p1103_p7 = pnand %p1102_p6, %p1096_p3 }
 0x935   :  { %718 = vrot.lane.b32.xlu0 %v628_v23, %s1147_s30 }
 0x99f   :  { %v649_v30 = vpop.permute.xlu0 %648 }
 0x9a0   :  { %842 = vmatmul.mubr.msk.bf16.vlgmr.msra.gmra.mxu1 %vm185_vm1, %v649_v30 }
 0x9a3   :  { %v711_v35 = vpop.permute.xlu0 %710 }
 0x9a7   :  { %v719_v45 = vpop.permute.xlu0 %718 }
 0xa60   :  { %v699_v34 = vpop.f32.mrf.mxu1 }
 0xa61   :  { %v700_v36 = vadd.f32 %v781_v31, %v699_v34 }
 0xa62   :  { %v843_v37 = vpop.f32.mrf.mxu1 }
 0xa63   :  { %v705_v38 = vmax.f32 %v700_v36, 0.0 }
 0xa64   :  { %v702_v40 = vpop.f32.mrf.mxu1 }
 0xa65   :  { %v722_v41 = vsel %vm721_vm5, %v705_v38, %v707_v33 }
 0xa66   :  { %v724_v43 = vsel %vm723_vm6, %v722_v41, %v711_v35  ;;  %v844_v44 = vpop.f32.mrf.mxu1 }
 0xa67   :  { %v726_v46 = vsel %vm725_vm7, %v724_v43, %v715_v42 }
 0xa68   :  { %v728_v48 = vsel %vm727_vm8, %v726_v46, %v719_v45 }
 0xa69   :  { %v730_v49 = vcombine.low %v728_v48, %v719_v45 }
 0xa6b   :  { %v737_v50 = vrot.slane %v730_v49, %v736_v47 }
 0xa6d   :  { %742 = vst.msk [vmem:[#allocation17] sm:$0xf] %vm741_vm11, %v737_v50 }
 0xa6e   :  { %1106 = shalt.err (!%p1103_p7)
}
 0xa6f   :  { %752 = dma.vmem_to_hbm [thread:$0]  %s750_s12, 64, %s1366_s13, [#allocation4]  }
 0xa70   :  { %1125 = dma.done.wait [#allocation4], 64  }
 0xa71   :  { %1126 = vsyncadd [#allocation4], 4294967232 }
 0xa72   :  { %756 = vsyncpa [#allocation3], 1 }
 0xa73   :  { %757 = vsyncpa [#allocation6], 1 }
 0xa74   :  { %758 = vsyncpa [#allocation9], 1 }
 0xa75   :  { %759 = vsyncpa [#allocation12], 1 }
 0xa76   :  { %760 = vsyncpa [#allocation15], 1 }
 0xa77   :  { %761 = vsyncpa [#allocation4], 1 }

</bundles_post_ra>
